<compile_context>
chip_gen: v6e
topology: v6e:2x2x1
jax: 0.10.0
libtpu: 0.0.40
codegen_flags: <defaults>
</compile_context>

<pallas_src>
import functools

import jax
import jax.numpy as jnp
from jax.experimental import pallas as pl
from jax.experimental.pallas import tpu as pltpu

# ---------------- model dims (from NN.__init__) ----------------
FLAT_FEAT = 1445        # self.flat_feat_num
H1 = 120                # fc1 out
H2 = 90                 # fc2 out
NUM_OUT = 5             # fc3 out (num_out_channels)
NEG_SLOPE = 0.01        # F.leaky_relu default


def _round_up(x, m):
    return (x + m - 1) // m * m


# ---------------- padded (TPU-friendly) dims ----------------
H1_PAD = _round_up(H1, 128)         # 128
H2_PAD = _round_up(H2, 128)         # 128
OUT_PAD = _round_up(NUM_OUT, 128)   # 128 (lane-dense output stores; sliced to 5 outside)

MAX_TILE_B = 512                    # batch tile: safe for v7x 64 MiB VMEM w/ double buffering


def _leaky_relu(x):
    return jnp.where(x > 0, x, NEG_SLOPE * x)


def mlp_kernel(x_ref, w1_ref, b1_ref, w2_ref, b2_ref, w3_ref, b3_ref, o_ref):
    """Fused MLP forward for one batch tile: 2x (Linear+leaky_relu) + Linear + softmax."""
    # bf16 operands into the MXU, f32 accumulation (preferred_element_type).
    x = x_ref[...].astype(jnp.bfloat16)

    h1 = jnp.dot(x, w1_ref[...], preferred_element_type=jnp.float32) + b1_ref[...]
    h1 = _leaky_relu(h1)

    h2 = jnp.dot(h1.astype(jnp.bfloat16), w2_ref[...],
                 preferred_element_type=jnp.float32) + b2_ref[...]
    h2 = _leaky_relu(h2)

    logits = jnp.dot(h2.astype(jnp.bfloat16), w3_ref[...],
                     preferred_element_type=jnp.float32) + b3_ref[...]

    # Mask padded output columns so softmax normalizes over the 5 real classes.
    col = jax.lax.broadcasted_iota(jnp.int32, logits.shape, 1)
    logits = jnp.where(col < NUM_OUT, logits, -jnp.inf)

    m = jnp.max(logits, axis=-1, keepdims=True)
    e = jnp.exp(logits - m)
    s = jnp.sum(e, axis=-1, keepdims=True)
    # EUP reciprocal (separate issue slot) instead of a VPU divide.
    o_ref[...] = e * pl.reciprocal(s, approx=True)


def prepare_params(w1, b1, w2, b2, w3, b3, compute_dtype=jnp.bfloat16):
    """Pad out/in feature dims to 128 and cast weights to the MXU compute dtype.

    Call ONCE at parameter-load time; the results are what `nn_forward` consumes.
    Zero-padding is inert: padded weight columns/rows are zero and padded bias
    entries are zero, so they contribute nothing to the real outputs.
    """
    w1 = jnp.asarray(w1, jnp.float32)
    w2 = jnp.asarray(w2, jnp.float32)
    w3 = jnp.asarray(w3, jnp.float32)
    w1p = jnp.pad(w1, ((0, 0), (0, H1_PAD - H1))).astype(compute_dtype)          # (1445, 128)
    w2p = jnp.pad(w2, ((0, H1_PAD - H1), (0, H2_PAD - H2))).astype(compute_dtype)  # (128, 128)
    w3p = jnp.pad(w3, ((0, H2_PAD - H2), (0, OUT_PAD - NUM_OUT))).astype(compute_dtype)  # (128, 128)
    b1p = jnp.pad(jnp.asarray(b1, jnp.float32).reshape(1, -1), ((0, 0), (0, H1_PAD - H1)))
    b2p = jnp.pad(jnp.asarray(b2, jnp.float32).reshape(1, -1), ((0, 0), (0, H2_PAD - H2)))
    b3p = jnp.pad(jnp.asarray(b3, jnp.float32).reshape(1, -1), ((0, 0), (0, OUT_PAD - NUM_OUT)))
    return w1p, b1p, w2p, b2p, w3p, b3p


@jax.jit
def nn_forward(x, w1p, b1p, w2p, b2p, w3p, b3p):
    """x: any shape (B, ...) that flattens to (B, 1445).  Params from prepare_params.

    Returns (B, 5) float32 softmax probabilities.
    """
    x = x.astype(jnp.float32)
    batch = x.shape[0]
    x = x.reshape(batch, -1)                      # x.view(batch_size, -1)
    assert x.shape[1] == FLAT_FEAT

    # Batch tiling: small batches -> single block equal to the full batch
    # (no padding, no copy).  Large batches -> 512-row tiles, batch padded up
    # to a multiple of the tile only when needed.
    if batch <= MAX_TILE_B:
        tile_b = batch
        b_pad = batch
    else:
        tile_b = MAX_TILE_B
        b_pad = _round_up(batch, tile_b)
        if b_pad != batch:
            x = jnp.pad(x, ((0, b_pad - batch), (0, 0)))

    grid = (b_pad // tile_b,)

    out_p = pl.pallas_call(
        mlp_kernel,
        out_shape=jax.ShapeDtypeStruct((b_pad, OUT_PAD), jnp.float32),
        grid=grid,
        in_specs=[
            # x streamed per batch tile (last dim = full 1445, so (8,128) rule is satisfied).
            pl.BlockSpec((tile_b, FLAT_FEAT), lambda i: (i, 0)),
            # weights/biases: constant block index -> VMEM-resident across grid steps.
            pl.BlockSpec((FLAT_FEAT, H1_PAD), lambda i: (0, 0)),
            pl.BlockSpec((1, H1_PAD), lambda i: (0, 0)),
            pl.BlockSpec((H1_PAD, H2_PAD), lambda i: (0, 0)),
            pl.BlockSpec((1, H2_PAD), lambda i: (0, 0)),
            pl.BlockSpec((H2_PAD, OUT_PAD), lambda i: (0, 0)),
            pl.BlockSpec((1, OUT_PAD), lambda i: (0, 0)),
        ],
        out_specs=pl.BlockSpec((tile_b, OUT_PAD), lambda i: (i, 0)),
        compiler_params=pltpu.CompilerParams(
            dimension_semantics=("parallel",),    # v7x: shard batch tiles over both TCs
        ),
    )(x, w1p, b1p, w2p, b2p, w3p, b3p)

    return out_p[:batch, :NUM_OUT]


def init_params(key):
    """Deterministic init mimicking PyTorch nn.Linear default (U(-1/sqrt(fan_in), ..))."""
    def linear(k, fan_in, fan_out):
        k1, k2 = jax.random.split(k)
        bound = 1.0 / jnp.sqrt(fan_in)
        w = jax.random.uniform(k1, (fan_in, fan_out), jnp.float32, -bound, bound)
        b = jax.random.uniform(k2, (fan_out,), jnp.float32, -bound, bound)
        return w, b

    k1, k2, k3 = jax.random.split(key, 3)
    w1, b1 = linear(k1, FLAT_FEAT, H1)
    w2, b2 = linear(k2, H1, H2)
    w3, b3 = linear(k3, H2, NUM_OUT)
    return w1, b1, w2, b2, w3, b3


def reference_forward(x, w1, b1, w2, b2, w3, b3):
    """Plain-JAX f32 reference matching the PyTorch forward."""
    x = x.astype(jnp.float32).reshape(x.shape[0], -1)
    h1 = jax.nn.leaky_relu(x @ w1 + b1, NEG_SLOPE)
    h2 = jax.nn.leaky_relu(h1 @ w2 + b2, NEG_SLOPE)
    return jax.nn.softmax(h2 @ w3 + b3, axis=1)


if __name__ == "__main__":
    key = jax.random.PRNGKey(0)
    kx, kp = jax.random.split(key)

    # Input consistent with the module: (batch=2, C=1, H=17, W=85) -> 1445 features.
    x = jax.random.normal(kx, (2, 1, 17, 85), jnp.float32)
    raw_params = init_params(kp)

    # Pad/cast the parameters once (outside the hot path).
    padded_params = prepare_params(*raw_params)

    out = nn_forward(x, *padded_params)
    out = jax.block_until_ready(out)

    ref = reference_forward(x, *raw_params)
    assert out.shape == (2, NUM_OUT)
    # bf16 MXU operands (f32 accumulation) -> slightly looser tolerance than pure f32.
    assert jnp.allclose(out, ref, atol=2e-2, rtol=1e-2), (
        f"max abs diff {jnp.max(jnp.abs(out - ref))}")
    # approx (EUP) reciprocal in the softmax -> rows sum to 1 within ~1e-3.
    assert jnp.allclose(jnp.sum(out, axis=1), 1.0, atol=5e-3)

    print("KERNEL_OK")
</pallas_src>

<mosaic_0001>
module attributes {stable_mosaic.version = 11 : i64} {
  func.func @mlp_kernel(%arg0: i32, %arg1: memref<2x1445xf32, #tpu.memory_space<vmem>>, %arg2: memref<1445x128xbf16, #tpu.memory_space<vmem>>, %arg3: memref<1x128xf32, #tpu.memory_space<vmem>>, %arg4: memref<128x128xbf16, #tpu.memory_space<vmem>>, %arg5: memref<1x128xf32, #tpu.memory_space<vmem>>, %arg6: memref<128x128xbf16, #tpu.memory_space<vmem>>, %arg7: memref<1x128xf32, #tpu.memory_space<vmem>>, %arg8: memref<2x128xf32, #tpu.memory_space<vmem>>) attributes {dimension_semantics = [#tpu.dimension_semantics<parallel>], iteration_bounds = array<i64: 1>, scalar_prefetch = 0 : i64, scratch_operands = 0 : i64, tpu.core_type = #tpu.core_type<tc>, window_params = [{transform_indices = @transform_0, window_bounds = array<i64: 2, 1445>}, {pipeline_mode = #tpu.pipeline_mode<synchronous>, transform_indices = @transform_1, window_bounds = array<i64: 1445, 128>}, {pipeline_mode = #tpu.pipeline_mode<synchronous>, transform_indices = @transform_2, window_bounds = array<i64: 1, 128>}, {pipeline_mode = #tpu.pipeline_mode<synchronous>, transform_indices = @transform_3, window_bounds = array<i64: 128, 128>}, {pipeline_mode = #tpu.pipeline_mode<synchronous>, transform_indices = @transform_4, window_bounds = array<i64: 1, 128>}, {pipeline_mode = #tpu.pipeline_mode<synchronous>, transform_indices = @transform_5, window_bounds = array<i64: 128, 128>}, {pipeline_mode = #tpu.pipeline_mode<synchronous>, transform_indices = @transform_6, window_bounds = array<i64: 1, 128>}, {transform_indices = @transform_7, window_bounds = array<i64: 2, 128>}]} {
    %c0 = arith.constant 0 : index
    %c0_0 = arith.constant 0 : index
    %0 = vector.load %arg1[%c0, %c0_0] : memref<2x1445xf32, #tpu.memory_space<vmem>>, vector<2x1445xf32>
    %1 = arith.truncf %0 : vector<2x1445xf32> to vector<2x1445xbf16>
    %c0_1 = arith.constant 0 : index
    %c0_2 = arith.constant 0 : index
    %2 = vector.load %arg2[%c0_1, %c0_2] : memref<1445x128xbf16, #tpu.memory_space<vmem>>, vector<1445x128xbf16>
    %cst = arith.constant dense<0.000000e+00> : vector<2x128xf32>
    %3 = tpu.matmul %1, %2, %cst {dimension_numbers = #tpu.dot_dimension_numbers<[1], [0], [0], [1], [0, 0, 1, 1], [], []>} : vector<2x1445xbf16>, vector<1445x128xbf16>, vector<2x128xf32> -> vector<2x128xf32>
    %c0_3 = arith.constant 0 : index
    %c0_4 = arith.constant 0 : index
    %4 = vector.load %arg3[%c0_3, %c0_4] : memref<1x128xf32, #tpu.memory_space<vmem>>, vector<1x128xf32>
    %5 = vector.broadcast %4 : vector<1x128xf32> to vector<2x128xf32>
    %6 = arith.addf %3, %5 : vector<2x128xf32>
    %cst_5 = arith.constant 0.000000e+00 : f32
    %7 = vector.broadcast %cst_5 : f32 to vector<2x128xf32>
    %8 = arith.cmpf ogt, %6, %7 : vector<2x128xf32>
    %cst_6 = arith.constant 0.00999999977 : f32
    %9 = vector.broadcast %cst_6 : f32 to vector<2x128xf32>
    %10 = arith.mulf %9, %6 : vector<2x128xf32>
    %11 = arith.select %8, %6, %10 : vector<2x128xi1>, vector<2x128xf32>
    %12 = arith.truncf %11 : vector<2x128xf32> to vector<2x128xbf16>
    %c0_7 = arith.constant 0 : index
    %c0_8 = arith.constant 0 : index
    %13 = vector.load %arg4[%c0_7, %c0_8] : memref<128x128xbf16, #tpu.memory_space<vmem>>, vector<128x128xbf16>
    %cst_9 = arith.constant dense<0.000000e+00> : vector<2x128xf32>
    %14 = tpu.matmul %12, %13, %cst_9 {dimension_numbers = #tpu.dot_dimension_numbers<[1], [0], [0], [1], [0, 0, 1, 1], [], []>} : vector<2x128xbf16>, vector<128x128xbf16>, vector<2x128xf32> -> vector<2x128xf32>
    %c0_10 = arith.constant 0 : index
    %c0_11 = arith.constant 0 : index
    %15 = vector.load %arg5[%c0_10, %c0_11] : memref<1x128xf32, #tpu.memory_space<vmem>>, vector<1x128xf32>
    %16 = vector.broadcast %15 : vector<1x128xf32> to vector<2x128xf32>
    %17 = arith.addf %14, %16 : vector<2x128xf32>
    %cst_12 = arith.constant 0.000000e+00 : f32
    %18 = vector.broadcast %cst_12 : f32 to vector<2x128xf32>
    %19 = arith.cmpf ogt, %17, %18 : vector<2x128xf32>
    %cst_13 = arith.constant 0.00999999977 : f32
    %20 = vector.broadcast %cst_13 : f32 to vector<2x128xf32>
    %21 = arith.mulf %20, %17 : vector<2x128xf32>
    %22 = arith.select %19, %17, %21 : vector<2x128xi1>, vector<2x128xf32>
    %23 = arith.truncf %22 : vector<2x128xf32> to vector<2x128xbf16>
    %c0_14 = arith.constant 0 : index
    %c0_15 = arith.constant 0 : index
    %24 = vector.load %arg6[%c0_14, %c0_15] : memref<128x128xbf16, #tpu.memory_space<vmem>>, vector<128x128xbf16>
    %cst_16 = arith.constant dense<0.000000e+00> : vector<2x128xf32>
    %25 = tpu.matmul %23, %24, %cst_16 {dimension_numbers = #tpu.dot_dimension_numbers<[1], [0], [0], [1], [0, 0, 1, 1], [], []>} : vector<2x128xbf16>, vector<128x128xbf16>, vector<2x128xf32> -> vector<2x128xf32>
    %c0_17 = arith.constant 0 : index
    %c0_18 = arith.constant 0 : index
    %26 = vector.load %arg7[%c0_17, %c0_18] : memref<1x128xf32, #tpu.memory_space<vmem>>, vector<1x128xf32>
    %27 = vector.broadcast %26 : vector<1x128xf32> to vector<2x128xf32>
    %28 = arith.addf %25, %27 : vector<2x128xf32>
    %29 = tpu.iota {dimensions = array<i32: 1>} : vector<2x128xi32>
    %c5_i32 = arith.constant 5 : i32
    %30 = vector.broadcast %c5_i32 : i32 to vector<2x128xi32>
    %31 = arith.cmpi slt, %29, %30 : vector<2x128xi32>
    %cst_19 = arith.constant 0xFF800000 : f32
    %32 = vector.broadcast %cst_19 : f32 to vector<2x128xf32>
    %33 = arith.select %31, %28, %32 : vector<2x128xi1>, vector<2x128xf32>
    %cst_20 = arith.constant dense<0xFF800000> : vector<2xf32>
    %34 = vector.multi_reduction <maximumf>, %33, %cst_20 [1] : vector<2x128xf32> to vector<2xf32>
    %35 = vector.shape_cast %34 : vector<2xf32> to vector<2x1xf32>
    %36 = vector.broadcast %35 : vector<2x1xf32> to vector<2x128xf32>
    %37 = arith.subf %33, %36 : vector<2x128xf32>
    %38 = math.exp %37 : vector<2x128xf32>
    %cst_21 = arith.constant dense<0.000000e+00> : vector<2xf32>
    %39 = vector.multi_reduction <add>, %38, %cst_21 [1] : vector<2x128xf32> to vector<2xf32>
    %40 = vector.shape_cast %39 : vector<2xf32> to vector<2x1xf32>
    %41 = tpu.reciprocal %40 {approx = true} : vector<2x1xf32> -> vector<2x1xf32>
    %42 = vector.broadcast %41 : vector<2x1xf32> to vector<2x128xf32>
    %43 = arith.mulf %38, %42 : vector<2x128xf32>
    %c0_22 = arith.constant 0 : index
    %c0_23 = arith.constant 0 : index
    %44 = vector.load %arg8[%c0_22, %c0_23] : memref<2x128xf32, #tpu.memory_space<vmem>>, vector<2x128xf32>
    tpu.vector_store %arg8[%c0_22, %c0_23], %43 {strides = array<i32>} : memref<2x128xf32, #tpu.memory_space<vmem>>, vector<2x128xf32>,
    return
  }
  func.func @transform_0(%arg0: i32) -> (i32, i32) {
    %c0_i32 = arith.constant 0 : i32
    %c0_i32_0 = arith.constant 0 : i32
    return %arg0, %c0_i32 : i32, i32
  }
  func.func @transform_1(%arg0: i32) -> (i32, i32) {
    %c0_i32 = arith.constant 0 : i32
    %c0_i32_0 = arith.constant 0 : i32
    %c0_i32_1 = arith.constant 0 : i32
    return %c0_i32, %c0_i32_0 : i32, i32
  }
  func.func @transform_2(%arg0: i32) -> (i32, i32) {
    %c0_i32 = arith.constant 0 : i32
    %c0_i32_0 = arith.constant 0 : i32
    %c0_i32_1 = arith.constant 0 : i32
    return %c0_i32, %c0_i32_0 : i32, i32
  }
  func.func @transform_3(%arg0: i32) -> (i32, i32) {
    %c0_i32 = arith.constant 0 : i32
    %c0_i32_0 = arith.constant 0 : i32
    %c0_i32_1 = arith.constant 0 : i32
    return %c0_i32, %c0_i32_0 : i32, i32
  }
  func.func @transform_4(%arg0: i32) -> (i32, i32) {
    %c0_i32 = arith.constant 0 : i32
    %c0_i32_0 = arith.constant 0 : i32
    %c0_i32_1 = arith.constant 0 : i32
    return %c0_i32, %c0_i32_0 : i32, i32
  }
  func.func @transform_5(%arg0: i32) -> (i32, i32) {
    %c0_i32 = arith.constant 0 : i32
    %c0_i32_0 = arith.constant 0 : i32
    %c0_i32_1 = arith.constant 0 : i32
    return %c0_i32, %c0_i32_0 : i32, i32
  }
  func.func @transform_6(%arg0: i32) -> (i32, i32) {
    %c0_i32 = arith.constant 0 : i32
    %c0_i32_0 = arith.constant 0 : i32
    %c0_i32_1 = arith.constant 0 : i32
    return %c0_i32, %c0_i32_0 : i32, i32
  }
  func.func @transform_7(%arg0: i32) -> (i32, i32) {
    %c0_i32 = arith.constant 0 : i32
    %c0_i32_0 = arith.constant 0 : i32
    return %arg0, %c0_i32 : i32, i32
  }
}

</mosaic_0001>

<bundles_post_ra>
// kernel: nn_forward.1
= control target key start
LH: loop header
LB: loop body
LE: loop exit
PB: predicated region body
PF: predicated region fallthrough
CT: control target
= control target key end

     0   :  { %12 = vsyncpa [#allocation3], 0  ;;  %s1976_s0 = inlined_call_operand.vmem [shape: f32[2,1445], index: 0, kind: input, shape index: {}]   ;;  %s1977_s1 = inlined_call_operand.hbm [shape: bf16[1445,128], index: 1, kind: input, shape index: {}]   ;;  %s1978_s2 = inlined_call_operand.vmem [shape: f32[1,128], index: 2, kind: input, shape index: {}]   ;;  %s1979_s3 = inlined_call_operand.vmem [shape: bf16[128,128], index: 3, kind: input, shape index: {}]   ;;  %s1980_s4 = inlined_call_operand.vmem [shape: f32[1,128], index: 4, kind: input, shape index: {}]   ;;  %s1981_s5 = inlined_call_operand.vmem [shape: bf16[128,128], index: 5, kind: input, shape index: {}]   ;;  %s1982_s6 = inlined_call_operand.vmem [shape: f32[1,128], index: 6, kind: input, shape index: {}]   ;;  %s1983_s7 = inlined_call_operand.hbm [shape: f32[2,128], index: 7, kind: output, shape index: {}]  }
   0x1   :  { %13 = vsyncpa [#allocation4], 0  ;;  %s1812_s24 = smov [#allocation2]  }
   0x2   :  { %s21_s25 = sshll.u32 %s1812_s24, 4  ;;  %s22_s25 = int_to_ptr.vmem [resolvable:$true] %s21_s25 }
   0x3   :  { %s1776_s26 = scalar_lea.vmem %s22_s25, 11584  ;;  %p1781_p1 = scmp.lt.s32.totalorder %s22_s25, %s22_s25 }
   0x4   :  { %p1777_p0 = scmp.ne.s32.totalorder %s22_s25, %s1776_s26  ;;  %p1782_p2 = scmp.lt.s32.totalorder %s1776_s26, %s1776_s26 }
   0x6   :  { %p1783_p3 = por %p1782_p2, %p1781_p1 }
   0x8   :  { %p1784_p4 = pnand %p1783_p3, %p1777_p0 }
   0xa   :  { %1787 = shalt.err (!%p1784_p4)
}
   0xb   :  { %s1813_s27 = smov 64   ;;  %s1814_s28 = smov 4  }
   0xc   :  { %27 = dma.hbm_to_vmem [thread:$0]  %s1977_s1, 11584, %s22_s25, [#allocation3], %s1813_s27, %s1813_s27, %s1814_s28  }
   0xd   :  { %1808 = dma.done.wait [#allocation3], 11584  }
   0xe   :  { %1809 = vsyncadd [#allocation3], 4294955712  ;;  %v1654_v0 = vld [vmem:[#allocation2 + $0x78] sm:$0xff]   ;;  %v1658_v4 = vld [vmem:[#allocation2 + $0x70] sm:$0xff]   ;;  %v1815_v22 = vmov 1983009808   ;;  %v52_v24 = vlaneseq }
   0xf   :  { %v1655_v1 = vld [vmem:[#allocation2 + $0xf8] sm:$0xff]   ;;  %1477 = vmatprep.subr.bf16.mxu0 %v1654_v0  ;;  %v1659_v5 = vld [vmem:[#allocation2 + $0xf0] sm:$0xff]   ;;  %v1662_v8 = vld [vmem:[#allocation2 + $0x68] sm:$0xff]   ;;  %v50_v23 = vunpack.c.l.s4 %v1815_v22  ;;  %vm858_vm0 = vcmask 1041408   ;;  %vm859_vm1 = vcmask 1042432   ;;  %vm854_vm2 = vcmask 302080  }
  0x10   :  { %v1656_v2 = vld [vmem:[#allocation2 + $0x38] sm:$0xff]   ;;  %1499 = vmatprep.subr.bf16.mxu1 %v1655_v1  ;;  %v1660_v6 = vld [vmem:[#allocation2 + $0x30] sm:$0xff]   ;;  %v1663_v9 = vld [vmem:[#allocation2 + $0xe8] sm:$0xff]   ;;  %v53_v30 = vshrl.u32 %v52_v24, 7  ;;  %vm1819_vm3 = vmmov 0  }
  0x11   :  { %v1657_v3 = vld [vmem:[#allocation2 + $0xb8] sm:$0xff]   ;;  %1478 = vmatpush3.bf16.msra.mxu0 %v1656_v2  ;;  %v1661_v7 = vld [vmem:[#allocation2 + $0xb0] sm:$0xff]   ;;  %v1664_v10 = vld [vmem:[#allocation2 + $0x28] sm:$0xff]   ;;  %v51_v29 = vunpack.c.0.s8 %v50_v23 }
  0x12   :  { %1500 = vmatpush3.bf16.msra.mxu1 %v1657_v3  ;;  %1479 = vmatprep.subr.bf16.mxu0 %v1658_v4  ;;  %v1665_v11 = vld [vmem:[#allocation2 + $0xa8] sm:$0xff]   ;;  %v1666_v12 = vld [vmem:[#allocation2 + $0x60] sm:$0xff]   ;;  %v1670_v16 = vld [vmem:[#allocation2 + $0x58] sm:$0xff]  }
  0x13   :  { %1501 = vmatprep.subr.bf16.mxu1 %v1659_v5  ;;  %v1667_v13 = vld [vmem:[#allocation2 + $0xe0] sm:$0xff]   ;;  %v1671_v17 = vld [vmem:[#allocation2 + $0xd8] sm:$0xff]   ;;  %v1674_v20 = vld [vmem:[#allocation2 + $0x50] sm:$0xff]   ;;  %v1865_v35 = vsub.s32 %v51_v29, %v53_v30 }
  0x14   :  { %v1668_v14 = vld [vmem:[#allocation2 + $0x20] sm:$0xff]   ;;  %v1672_v18 = vld [vmem:[#allocation2 + $0x18] sm:$0xff]   ;;  %v1675_v21 = vld [vmem:[#allocation2 + $0xd0] sm:$0xff]  }
  0x15   :  { %1480 = vmatpush3.bf16.msra.mxu0 %v1660_v6  ;;  %v1669_v15 = vld [vmem:[#allocation2 + $0xa0] sm:$0xff]   ;;  %v1673_v19 = vld [vmem:[#allocation2 + $0x98] sm:$0xff]   ;;  %v1676_v25 = vld [vmem:[#allocation2 + $0x10] sm:$0xff]  }
  0x16   :  { %1502 = vmatpush3.bf16.msra.mxu1 %v1661_v7  ;;  %1481 = vmatprep.subr.bf16.mxu0 %v1662_v8  ;;  %v1677_v26 = vld [vmem:[#allocation2 + $0x90] sm:$0xff]   ;;  %v1678_v27 = vld [vmem:[#allocation2 + $0x48] sm:$0xff]   ;;  %v1682_v33 = vld [vmem:[#allocation2 + $0x40] sm:$0xff]  }
  0x17   :  { %1503 = vmatprep.subr.bf16.mxu1 %v1663_v9  ;;  %v1679_v28 = vld [vmem:[#allocation2 + $0xc8] sm:$0xff]   ;;  %v1683_v34 = vld [vmem:[#allocation2 + $0xc0] sm:$0xff]   ;;  %v1687_v41 = vld [vmem:[#allocation2 + $0x178] sm:$0xff]  }
  0x18   :  { %v1680_v31 = vld [vmem:[#allocation2 + $0x8] sm:$0xff]   ;;  %v1684_v36 = vld [vmem:[#allocation2] sm:$0xff]   ;;  %v1688_v42 = vld [vmem:[#allocation2 + $0x1f8] sm:$0xff]  }
  0x19   :  { %1482 = vmatpush3.bf16.msra.mxu0 %v1664_v10  ;;  %v1681_v32 = vld [vmem:[#allocation2 + $0x88] sm:$0xff]   ;;  %v1685_v37 = vld [vmem:[#allocation2 + $0x80] sm:$0xff]   ;;  %v1689_v48 = vld [vmem:[#allocation2 + $0x138] sm:$0xff]  }
  0x1a   :  { %1504 = vmatpush3.bf16.msra.mxu1 %v1665_v11  ;;  %1483 = vmatprep.subr.bf16.mxu0 %v1666_v12  ;;  %v42_v38 = vld [vmem:[%s1976_s0] sm:$0xff]  ;;  %v1691_v50 = vld [vmem:[#allocation2 + $0x170] sm:$0xff]   ;;  %v1690_v52 = vld [vmem:[#allocation2 + $0x1b8] sm:$0xff]  }
  0x1b   :  { %1505 = vmatprep.subr.bf16.mxu1 %v1667_v13  ;;  %v55_v39 = vrot.slane %v42_v38, %v1865_v35  ;;  %v48_v40 = vcombine.high %v42_v38, %v42_v38  ;;  %v1692_v53 = vld [vmem:[#allocation2 + $0x1f0] sm:$0xff]   ;;  %v1695_v55 = vld [vmem:[#allocation2 + $0x168] sm:$0xff]   ;;  %v1699_v59 = vld [vmem:[#allocation2 + $0x160] sm:$0xff]  }
  0x1c   :  { %v1693_v54 = vld [vmem:[#allocation2 + $0x130] sm:$0xff]   ;;  %v1696_v57 = vld [vmem:[#allocation2 + $0x1e8] sm:$0xff]   ;;  %v1700_v61 = vld [vmem:[#allocation2 + $0x1e0] sm:$0xff]  }
  0x1d   :  { %1484 = vmatpush3.bf16.msra.mxu0 %v1668_v14  ;;  %v63_v43 = vcombine.high %v55_v39, %v55_v39  ;;  %v62_v44 = vrot.slane %v48_v40, %v1865_v35  ;;  %v111_v45 = vpack.c.bf16 %v55_v39, %v55_v39  ;;  %v1694_v56 = vld [vmem:[#allocation2 + $0x1b0] sm:$0xff]   ;;  %v1697_v58 = vld [vmem:[#allocation2 + $0x128] sm:$0xff]   ;;  %v1701_v62 = vld [vmem:[#allocation2 + $0x120] sm:$0xff]  }
  0x1e   :  { %1506 = vmatpush3.bf16.msra.mxu1 %v1669_v15  ;;  %1485 = vmatprep.subr.bf16.mxu0 %v1670_v16  ;;  %v1698_v60 = vld [vmem:[#allocation2 + $0x1a8] sm:$0xff]   ;;  %v1703_v63 = vld [vmem:[#allocation2 + $0x158] sm:$0xff]   ;;  %v1702_v0 = vld [vmem:[#allocation2 + $0x1a0] sm:$0xff]  }
  0x1f   :  { %1507 = vmatprep.subr.bf16.mxu1 %v1671_v17  ;;  %v112_v46 = vpack.c.bf16 %v63_v43, %v63_v43  ;;  %v64_v47 = vcombine.high %v62_v44, %v62_v44  ;;  %v113_v49 = vpack.c.bf16 %v62_v44, %v62_v44  ;;  %v1704_v1 = vld [vmem:[#allocation2 + $0x1d8] sm:$0xff]   ;;  %v1707_v3 = vld [vmem:[#allocation2 + $0x150] sm:$0xff]   ;;  %v1711_v7 = vld [vmem:[#allocation2 + $0x148] sm:$0xff]  }
  0x20   :  { %v1705_v2 = vld [vmem:[#allocation2 + $0x118] sm:$0xff]   ;;  %v1708_v5 = vld [vmem:[#allocation2 + $0x1d0] sm:$0xff]   ;;  %v1712_v9 = vld [vmem:[#allocation2 + $0x1c8] sm:$0xff]  }
  0x21   :  { %1486 = vmatpush3.bf16.msra.mxu0 %v1672_v18  ;;  %897 = vmatprep.mubr.bf16.mxu0 %v112_v46  ;;  %v114_v51 = vpack.c.bf16 %v64_v47, %v64_v47  ;;  %v1706_v4 = vld [vmem:[#allocation2 + $0x198] sm:$0xff]   ;;  %v1709_v6 = vld [vmem:[#allocation2 + $0x110] sm:$0xff]   ;;  %v1713_v10 = vld [vmem:[#allocation2 + $0x108] sm:$0xff]   ;;  %v1817_v47 = vmov 65535  }
  0x22   :  { %1508 = vmatpush3.bf16.msra.mxu1 %v1673_v19  ;;  %1487 = vmatprep.subr.bf16.mxu0 %v1674_v20  ;;  %v1710_v8 = vld [vmem:[#allocation2 + $0x190] sm:$0xff]   ;;  %v1715_v11 = vld [vmem:[#allocation2 + $0x140] sm:$0xff]   ;;  %v1714_v12 = vld [vmem:[#allocation2 + $0x188] sm:$0xff]  }
  0x23   :  { %1509 = vmatprep.subr.bf16.mxu1 %v1675_v21  ;;  %937 = vmatprep.mubr.bf16.mxu1 %v114_v51  ;;  %v1716_v13 = vld [vmem:[#allocation2 + $0x1c0] sm:$0xff]   ;;  %v43_v14 = vld [vmem:[%s1976_s0 + $0x8] sm:$0xff]  ;;  %v1720_v18 = vld [vmem:[#allocation2 + $0x278] sm:$0xff]  }
  0x24   :  { %v1717_v15 = vld [vmem:[#allocation2 + $0x100] sm:$0xff]   ;;  %v72_v16 = vrot.slane %v43_v14, %v1865_v35  ;;  %v65_v17 = vcombine.high %v43_v14, %v43_v14  ;;  %v1722_v30 = vld [vmem:[#allocation2 + $0x2b8] sm:$0xff]   ;;  %v1728_v38 = vld [vmem:[#allocation2 + $0x2a8] sm:$0xff]  }
  0x25   :  { %1488 = vmatpush3.bf16.msra.mxu0 %v1676_v25  ;;  %v1718_v19 = vld [vmem:[#allocation2 + $0x180] sm:$0xff]   ;;  %v1732_v40 = vld [vmem:[#allocation2 + $0x258] sm:$0xff]   ;;  %v1735_v43 = vld [vmem:[#allocation2 + $0x250] sm:$0xff]  }
  0x26   :  { %1510 = vmatpush3.bf16.msra.mxu1 %v1677_v26  ;;  %1489 = vmatprep.subr.bf16.mxu0 %v1678_v27  ;;  %v80_v20 = vcombine.high %v72_v16, %v72_v16  ;;  %v79_v21 = vrot.slane %v65_v17, %v1865_v35  ;;  %v115_v22 = vpack.c.bf16 %v72_v16, %v72_v16  ;;  %v1721_v26 = vld [vmem:[#allocation2 + $0x238] sm:$0xff]   ;;  %v1730_v39 = vld [vmem:[#allocation2 + $0x220] sm:$0xff]   ;;  %v44_v46 = vld [vmem:[%s1976_s0 + $0x10] sm:$0xff] }
  0x27   :  { %1511 = vmatprep.subr.bf16.mxu1 %v1679_v28  ;;  %v1723_v28 = vld [vmem:[#allocation2 + $0x270] sm:$0xff]   ;;  %v1734_v44 = vld [vmem:[#allocation2 + $0x298] sm:$0xff]   ;;  %v82_v51 = vcombine.high %v44_v46, %v44_v46  ;;  %v1758_v16 = vld [vmem:[%s1981_s5 + $0x28] sm:$0xff]  }
  0x28   :  { %v116_v23 = vpack.c.bf16 %v80_v20, %v80_v20  ;;  %v81_v25 = vcombine.high %v79_v21, %v79_v21  ;;  %v117_v27 = vpack.c.bf16 %v79_v21, %v79_v21  ;;  %v1756_v14 = vld [vmem:[%s1981_s5 + $0x38] sm:$0xff]   ;;  %v1759_v17 = vld [vmem:[%s1981_s5 + $0x20] sm:$0xff]  }
  0x29   :  { %1490 = vmatpush3.bf16.msra.mxu0 %v1680_v31  ;;  %v1816_v31 = vmov 0  }
  0x2a   :  { %1512 = vmatpush3.bf16.msra.mxu1 %v1681_v32  ;;  %1491 = vmatprep.subr.bf16.mxu0 %v1682_v33  ;;  %v118_v29 = vpack.c.bf16 %v81_v25, %v81_v25  ;;  %v1724_v32 = vld [vmem:[#allocation2 + $0x230] sm:$0xff]   ;;  %v1726_v33 = vld [vmem:[#allocation2 + $0x268] sm:$0xff]  }
  0x2b   :  { %1513 = vmatprep.subr.bf16.mxu1 %v1683_v34  ;;  %v1725_v34 = vld [vmem:[#allocation2 + $0x2b0] sm:$0xff]  }
  0x2d   :  { %1492 = vmatpush3.bf16.msra.mxu0 %v1684_v36  ;;  %v1727_v36 = vld [vmem:[#allocation2 + $0x228] sm:$0xff]  }
  0x2e   :  { %1514 = vmatpush3.bf16.msra.mxu1 %v1685_v37  ;;  %1521 = vmatprep.subr.bf16.mxu0 %v1687_v41  ;;  %v1729_v37 = vld [vmem:[#allocation2 + $0x260] sm:$0xff]  }
  0x2f   :  { %1543 = vmatprep.subr.bf16.mxu1 %v1688_v42  ;;  %v1731_v41 = vld [vmem:[#allocation2 + $0x2a0] sm:$0xff]   ;;  %v1733_v42 = vld [vmem:[#allocation2 + $0x218] sm:$0xff]  }
  0x30   :  { %898 = vmatmul.mubr.bf16.vlgmr.msra.gmra.mxu0 %v111_v45  ;;  %v1736_v45 = vld [vmem:[#allocation2 + $0x210] sm:$0xff]  }
  0x31   :  { %1522 = vmatpush3.bf16.msra.mxu0 %v1689_v48  ;;  %938 = vmatmul.mubr.bf16.vlgmr.msra.gmra.mxu1 %v113_v49  ;;  %v860_v48 = vsel %vm858_vm0, 4294967295, %v1817_v47  ;;  %v1737_v49 = vld [vmem:[#allocation2 + $0x290] sm:$0xff]  }
  0x32   :  { %1523 = vmatprep.subr.bf16.mxu0 %v1691_v50  ;;  %1544 = vmatpush3.bf16.msra.mxu1 %v1690_v52  ;;  %v1738_v50 = vld [vmem:[#allocation2 + $0x248] sm:$0xff]   ;;  %v89_v52 = vrot.slane %v44_v46, %v1865_v35 }
  0x33   :  { %1545 = vmatprep.subr.bf16.mxu1 %v1692_v53  ;;  %977 = vmatprep.mubr.bf16.mxu0 %v116_v23  ;;  %v1739_v53 = vld [vmem:[#allocation2 + $0x208] sm:$0xff]  }
  0x34   :  { %1017 = vmatprep.mubr.bf16.mxu1 %v118_v29 }
  0x35   :  { %1524 = vmatpush3.bf16.msra.mxu0 %v1693_v54  ;;  %v97_v54 = vcombine.high %v89_v52, %v89_v52 }
  0x36   :  { %1525 = vmatprep.subr.bf16.mxu0 %v1695_v55  ;;  %1546 = vmatpush3.bf16.msra.mxu1 %v1694_v56  ;;  %v861_v55 = vsel %vm859_vm1, %v860_v48, 0  ;;  %v96_v56 = vrot.slane %v82_v51, %v1865_v35  ;;  %v119_v35 = vpack.c.bf16 %v89_v52, %v89_v52 }
  0x37   :  { %1547 = vmatprep.subr.bf16.mxu1 %v1696_v57  ;;  %v1741_v57 = vld [vmem:[#allocation2 + $0x240] sm:$0xff]  }
  0x39   :  { %1526 = vmatpush3.bf16.msra.mxu0 %v1697_v58  ;;  %v1740_v58 = vld [vmem:[#allocation2 + $0x288] sm:$0xff]  }
  0x3a   :  { %1527 = vmatprep.subr.bf16.mxu0 %v1699_v59  ;;  %1548 = vmatpush3.bf16.msra.mxu1 %v1698_v60  ;;  %v120_v59 = vpack.c.bf16 %v97_v54, %v97_v54  ;;  %v98_v60 = vcombine.high %v96_v56, %v96_v56 }
  0x3b   :  { %1549 = vmatprep.subr.bf16.mxu1 %v1700_v61  ;;  %v1742_v61 = vld [vmem:[#allocation2 + $0x200] sm:$0xff]  }
  0x3d   :  { %1528 = vmatpush3.bf16.msra.mxu0 %v1701_v62  ;;  %v122_v62 = vpack.c.bf16 %v98_v60, %v98_v60 }
  0x3e   :  { %1529 = vmatprep.subr.bf16.mxu0 %v1703_v63  ;;  %1550 = vmatpush3.bf16.msra.mxu1 %v1702_v0  ;;  %v1743_v63 = vld [vmem:[#allocation2 + $0x280] sm:$0xff]   ;;  %v1745_v0 = vld [vmem:[#allocation2 + $0x2d0] ss:$0 sps:$4 sm:$0x77]  }
  0x3f   :  { %1551 = vmatprep.subr.bf16.mxu1 %v1704_v1  ;;  %v863_v1 = vand.u32 %v1745_v0, %v861_v55 }
  0x41   :  { %1530 = vmatpush3.bf16.msra.mxu0 %v1705_v2  ;;  %v1746_v2 = vld [vmem:[#allocation2 + $0x2c8] sm:$0xff]  }
  0x42   :  { %1531 = vmatprep.subr.bf16.mxu0 %v1707_v3  ;;  %1552 = vmatpush3.bf16.msra.mxu1 %v1706_v4  ;;  %v1747_v3 = vld [vmem:[#allocation2 + $0x2c0] sm:$0xff]   ;;  %v121_v4 = vpack.c.bf16 %v96_v56, %v96_v56 }
  0x43   :  { %1553 = vmatprep.subr.bf16.mxu1 %v1708_v5  ;;  %v1748_v5 = vld [vmem:[%s1979_s3 + $0x38] sm:$0xff]  }
  0x45   :  { %1532 = vmatpush3.bf16.msra.mxu0 %v1709_v6  ;;  %v1818_v6 = vmov 0.0  }
  0x46   :  { %1533 = vmatprep.subr.bf16.mxu0 %v1711_v7  ;;  %1554 = vmatpush3.bf16.msra.mxu1 %v1710_v8  ;;  %v1749_v7 = vld [vmem:[%s1979_s3 + $0x30] sm:$0xff]   ;;  %v1750_v8 = vld [vmem:[%s1979_s3 + $0x28] sm:$0xff]  }
  0x47   :  { %1555 = vmatprep.subr.bf16.mxu1 %v1712_v9  ;;  %v1751_v9 = vld [vmem:[%s1979_s3 + $0x20] sm:$0xff]  }
  0x49   :  { %1534 = vmatpush3.bf16.msra.mxu0 %v1713_v10  ;;  %v1752_v10 = vld [vmem:[%s1979_s3 + $0x18] sm:$0xff]  }
  0x4a   :  { %1535 = vmatprep.subr.bf16.mxu0 %v1715_v11  ;;  %1556 = vmatpush3.bf16.msra.mxu1 %v1714_v12  ;;  %v1753_v11 = vld [vmem:[%s1979_s3 + $0x10] sm:$0xff]   ;;  %v1754_v12 = vld [vmem:[%s1979_s3 + $0x8] sm:$0xff]  }
  0x4b   :  { %1557 = vmatprep.subr.bf16.mxu1 %v1716_v13  ;;  %v1755_v13 = vld [vmem:[%s1979_s3] sm:$0xff]  }
  0x4d   :  { %1536 = vmatpush3.bf16.msra.mxu0 %v1717_v15  ;;  %v1757_v15 = vld [vmem:[%s1981_s5 + $0x30] sm:$0xff]  }
  0x4e   :  { %1565 = vmatprep.subr.bf16.mxu0 %v1720_v18  ;;  %1558 = vmatpush3.bf16.msra.mxu1 %v1718_v19  ;;  %v1760_v18 = vld [vmem:[%s1981_s5 + $0x18] sm:$0xff]   ;;  %v1761_v19 = vld [vmem:[%s1981_s5 + $0x10] sm:$0xff]  }
  0x4f   :  { %1065 = vmatprep.subr.bf16.mxu1 %v1816_v31 }
  0x50   :  { %978 = vmatmul.mubr.bf16.vlgmr.msra.gmra.mxu0 %v115_v22  ;;  %v1366_v22 = vld [vmem:[%s1978_s2] ss:$0 sm:$0xff] }
  0x51   :  { %1566 = vmatpush3.bf16.msra.mxu0 %v1721_v26  ;;  %1018 = vmatmul.mubr.bf16.vlgmr.msra.gmra.mxu1 %v117_v27 }
  0x52   :  { %1567 = vmatprep.subr.bf16.mxu0 %v1723_v28  ;;  %1066 = vmatpush1.bf16.msra.mxu1 %v1722_v30 }
  0x53   :  { %1067 = vmatprep.subr.bf16.mxu1 %v1816_v31  ;;  %1057 = vmatprep.mubr.bf16.mxu0 %v120_v59 }
  0x54   :  { %1458 = vmatprep.mubr.msk.bf16.mxu1 %vm854_vm2, %v122_v62  ;;  %v1763_v62 = vld [vmem:[%s1981_s5] sm:$0xff]  }
  0x55   :  { %1568 = vmatpush3.bf16.msra.mxu0 %v1724_v32 }
  0x56   :  { %1569 = vmatprep.subr.bf16.mxu0 %v1726_v33  ;;  %1068 = vmatpush1.bf16.msra.mxu1 %v1725_v34 }
  0x57   :  { %1069 = vmatprep.subr.bf16.mxu1 %v1816_v31 }
  0x59   :  { %1570 = vmatpush3.bf16.msra.mxu0 %v1727_v36 }
  0x5a   :  { %1571 = vmatprep.subr.bf16.mxu0 %v1729_v37  ;;  %1070 = vmatpush1.bf16.msra.mxu1 %v1728_v38 }
  0x5b   :  { %1071 = vmatprep.subr.bf16.mxu1 %v1816_v31 }
  0x5d   :  { %1572 = vmatpush3.bf16.msra.mxu0 %v1730_v39 }
  0x5e   :  { %1573 = vmatprep.subr.bf16.mxu0 %v1732_v40  ;;  %1072 = vmatpush1.bf16.msra.mxu1 %v1731_v41 }
  0x5f   :  { %1073 = vmatprep.subr.bf16.mxu1 %v1816_v31 }
  0x61   :  { %1574 = vmatpush3.bf16.msra.mxu0 %v1733_v42 }
  0x62   :  { %1575 = vmatprep.subr.bf16.mxu0 %v1735_v43  ;;  %1074 = vmatpush1.bf16.msra.mxu1 %v1734_v44 }
  0x63   :  { %1075 = vmatprep.subr.bf16.mxu1 %v1816_v31 }
  0x65   :  { %1576 = vmatpush3.bf16.msra.mxu0 %v1736_v45 }
  0x66   :  { %1577 = vmatprep.subr.bf16.mxu0 %v1738_v50  ;;  %1076 = vmatpush1.bf16.msra.mxu1 %v1737_v49 }
  0x67   :  { %1077 = vmatprep.subr.bf16.mxu1 %v1816_v31 }
  0x69   :  { %1578 = vmatpush3.bf16.msra.mxu0 %v1739_v53 }
  0x6a   :  { %1579 = vmatprep.subr.bf16.mxu0 %v1741_v57  ;;  %1078 = vmatpush1.bf16.msra.mxu1 %v1740_v58 }
  0x6b   :  { %1079 = vmatprep.subr.bf16.mxu1 %v1816_v31 }
  0x6d   :  { %1580 = vmatpush3.bf16.msra.mxu0 %v1742_v61  ;;  %v1762_v61 = vld [vmem:[%s1981_s5 + $0x8] sm:$0xff]  }
  0x6e   :  { %1080 = vmatpush1.bf16.msra.mxu1 %v1743_v63  ;;  %1605 = vmatprep.subr.bf16.mxu0 %v1818_v6  ;;  %v1459_v63 = vld [vmem:[%s1980_s4] ss:$0 sm:$0xff]  ;;  %s1820_s4 = smov [#allocation5]  }
  0x6f   :  { %1091 = vmatprep.subr.bf16.mxu1 %v1816_v31  ;;  %s1357_s5 = sshll.u32 %s1820_s4, 4  ;;  %s1358_s5 = int_to_ptr.vmem [resolvable:$true] %s1357_s5 }
  0x70   :  { %1058 = vmatmul.mubr.bf16.vlgmr.msra.gmra.mxu0 %v119_v35  ;;  %p1793_p6 = scmp.lt.s32.totalorder %s1358_s5, %s1358_s5 }
  0x71   :  { %1606 = vmatpush3.bf16.msra.mxu0 %v1748_v5  ;;  %1621 = vmatprep.mubr.msk.bf16.mxu0 %vm1819_vm3, %v1818_v6 }
  0x72   :  { %1092 = vmatpush2.bf16.msra.mxu1 %v863_v1  ;;  %1607 = vmatprep.subr.bf16.mxu0 %v1818_v6 }
  0x73   :  { %1093 = vmatprep.subr.bf16.mxu1 %v1816_v31 }
  0x75   :  { %1608 = vmatpush3.bf16.msra.mxu0 %v1749_v7 }
  0x76   :  { %1094 = vmatpush2.bf16.msra.mxu1 %v1746_v2  ;;  %1609 = vmatprep.subr.bf16.mxu0 %v1818_v6 }
  0x77   :  { %1095 = vmatprep.subr.bf16.mxu1 %v1816_v31 }
  0x79   :  { %1610 = vmatpush3.bf16.msra.mxu0 %v1750_v8  ;;  %v1468_v8 = vld [vmem:[%s1982_s6] ss:$0 sm:$0xff]  ;;  %s1788_s6 = scalar_lea.vmem %s1358_s5, 32 }
  0x7a   :  { %1096 = vmatpush2.bf16.msra.mxu1 %v1747_v3  ;;  %1611 = vmatprep.subr.bf16.mxu0 %v1818_v6  ;;  %p1789_p5 = scmp.ne.s32.totalorder %s1358_s5, %s1788_s6  ;;  %p1794_p7 = scmp.lt.s32.totalorder %s1788_s6, %s1788_s6 }
  0x7b   :  { %1625 = vmatprep.subr.bf16.mxu1 %v1818_v6 }
  0x7c   :  { %p1795_p8 = por %p1794_p7, %p1793_p6 }
  0x7d   :  { %1098 = vmatmul.mubr.bf16.vlgmr.msra.gmra.mxu1 %v121_v4  ;;  %1612 = vmatpush3.bf16.msra.mxu0 %v1751_v9 }
  0x7e   :  { %1613 = vmatprep.subr.bf16.mxu0 %v1818_v6  ;;  %1641 = vmatprep.mubr.msk.bf16.mxu1 %vm1819_vm3, %v1818_v6  ;;  %p1796_p9 = pnand %p1795_p8, %p1789_p5 }
  0x7f   :  { %1626 = vmatpush3.bf16.msra.mxu1 %v1756_v14 }
  0x80   :  { %1627 = vmatprep.subr.bf16.mxu1 %v1818_v6 }
  0x81   :  { %1614 = vmatpush3.bf16.msra.mxu0 %v1752_v10 }
  0x82   :  { %1615 = vmatprep.subr.bf16.mxu0 %v1818_v6 }
  0x83   :  { %1628 = vmatpush3.bf16.msra.mxu1 %v1757_v15 }
  0x84   :  { %1629 = vmatprep.subr.bf16.mxu1 %v1818_v6 }
  0x85   :  { %1616 = vmatpush3.bf16.msra.mxu0 %v1753_v11 }
  0x86   :  { %1617 = vmatprep.subr.bf16.mxu0 %v1818_v6 }
  0x87   :  { %1630 = vmatpush3.bf16.msra.mxu1 %v1758_v16 }
  0x88   :  { %1631 = vmatprep.subr.bf16.mxu1 %v1818_v6 }
  0x89   :  { %1618 = vmatpush3.bf16.msra.mxu0 %v1754_v12 }
  0x8a   :  { %1619 = vmatprep.subr.bf16.mxu0 %v1818_v6 }
  0x8b   :  { %1632 = vmatpush3.bf16.msra.mxu1 %v1759_v17 }
  0x8c   :  { %1633 = vmatprep.subr.bf16.mxu1 %v1818_v6 }
  0x8d   :  { %1620 = vmatpush3.bf16.msra.mxu0 %v1755_v13 }
  0x8f   :  { %1634 = vmatpush3.bf16.msra.mxu1 %v1760_v18 }
  0x90   :  { %1635 = vmatprep.subr.bf16.mxu1 %v1818_v6 }
  0x93   :  { %1636 = vmatpush3.bf16.msra.mxu1 %v1761_v19 }
  0x94   :  { %1637 = vmatprep.subr.bf16.mxu1 %v1818_v6 }
  0x97   :  { %1638 = vmatpush3.bf16.msra.mxu1 %v1762_v61 }
  0x98   :  { %1639 = vmatprep.subr.bf16.mxu1 %v1818_v6  ;;  %v1336_v6 = vand.u32 127, %v52_v24 }
  0x9a   :  { %vm1337_vm6 = vcmp.lt.s32.totalorder %v1336_v6, 5 }
  0x9b   :  { %1640 = vmatpush3.bf16.msra.mxu1 %v1763_v62 }
  0xf0   :  { %v1493_v20 = vpop.f32.mrf.mxu0 }
  0xf1   :  { %v1515_v21 = vpop.f32.mrf.mxu1 }
  0xf2   :  { %v1494_v23 = vpop.f32.mrf.mxu0 }
  0xf3   :  { %v1495_v25 = vadd.f32 %v1494_v23, %v1493_v20  ;;  %v1516_v26 = vpop.f32.mrf.mxu1 }
  0xf4   :  { %v1496_v27 = vpop.f32.mrf.mxu0  ;;  %v1517_v29 = vadd.f32 %v1516_v26, %v1515_v21 }
  0xf5   :  { %v900_v28 = vadd.f32 %v1495_v25, %v1366_v22  ;;  %v1518_v30 = vpop.f32.mrf.mxu1 }
  0xf6   :  { %v1497_v31 = vpop.f32.mrf.mxu0 }
  0xf7   :  { %v940_v32 = vadd.f32 %v1517_v29, %v900_v28  ;;  %v1519_v33 = vpop.f32.mrf.mxu1 }
 0x110   :  { %v1537_v34 = vpop.f32.mrf.mxu0 }
 0x111   :  { %v1559_v36 = vpop.f32.mrf.mxu1 }
 0x112   :  { %v1538_v37 = vpop.f32.mrf.mxu0 }
 0x113   :  { %v1560_v38 = vpop.f32.mrf.mxu1  ;;  %v1539_v45 = vadd.f32 %v1538_v37, %v1537_v34 }
 0x114   :  { %v1540_v39 = vpop.f32.mrf.mxu0  ;;  %v1561_v49 = vadd.f32 %v1560_v38, %v1559_v36 }
 0x115   :  { %v1562_v40 = vpop.f32.mrf.mxu1  ;;  %v980_v48 = vadd.f32 %v1539_v45, %v940_v32 }
 0x116   :  { %v1541_v41 = vpop.f32.mrf.mxu0 }
 0x117   :  { %v1563_v42 = vpop.f32.mrf.mxu1  ;;  %v1020_v51 = vadd.f32 %v1561_v49, %v980_v48 }
 0x130   :  { %v1581_v43 = vpop.f32.mrf.mxu0 }
 0x132   :  { %v1582_v44 = vpop.f32.mrf.mxu0 }
 0x133   :  { %v1583_v50 = vadd.f32 %v1582_v44, %v1581_v43 }
 0x134   :  { %v1584_v46 = vpop.f32.mrf.mxu0 }
 0x135   :  { %v1060_v52 = vadd.f32 %v1583_v50, %v1020_v51 }
 0x136   :  { %v1585_v47 = vpop.f32.mrf.mxu0 }
 0x13d   :  { %v1099_v53 = vpop.f32.mrf.mxu1 }
 0x13e   :  { %v1100_v54 = vadd.f32 %v1099_v53, %v1060_v52 }
 0x13f   :  { %v1101_v55 = vpop.f32.mrf.mxu1 }
 0x140   :  { %vm1105_vm4 = vcmp.gt.f32.partialorder %v1100_v54, 0.0  ;;  %v1106_v56 = vmul.f32 0.01, %v1100_v54 }
 0x141   :  { %v1102_v57 = vpop.f32.mrf.mxu1 }
 0x142   :  { %v1107_v58 = vsel %vm1105_vm4, %v1100_v54, %v1106_v56 }
 0x143   :  { %v1108_v59 = vpack.c.bf16 %v1107_v58, %v1107_v58  ;;  %v1103_v60 = vpop.f32.mrf.mxu1 }
 0x145   :  { %1622 = vmatmul.mubr.bf16.vlgmr.msra.gmra.mxu0 %v1108_v59 }
 0x205   :  { %v1214_v0 = vpop.f32.mrf.mxu0 }
 0x206   :  { %v1215_v35 = vadd.f32 %v1459_v63, %v1214_v0 }
 0x207   :  { %v1623_v1 = vpop.f32.mrf.mxu0 }
 0x208   :  { %vm1220_vm5 = vcmp.gt.f32.partialorder %v1215_v35, 0.0  ;;  %v1221_v2 = vmul.f32 0.01, %v1215_v35 }
 0x209   :  { %v1217_v3 = vpop.f32.mrf.mxu0 }
 0x20a   :  { %v1222_v4 = vsel %vm1220_vm5, %v1215_v35, %v1221_v2 }
 0x20b   :  { %v1223_v5 = vpack.c.bf16 %v1222_v4, %v1222_v4  ;;  %v1624_v7 = vpop.f32.mrf.mxu0 }
 0x20d   :  { %1642 = vmatmul.mubr.bf16.vlgmr.msra.gmra.mxu1 %v1223_v5 }
 0x2cd   :  { %v1329_v9 = vpop.f32.mrf.mxu1 }
 0x2ce   :  { %v1330_v10 = vadd.f32 %v1468_v8, %v1329_v9 }
 0x2cf   :  { %v1643_v11 = vpop.f32.mrf.mxu1 }
 0x2d0   :  { %v1338_v12 = vsel %vm1337_vm6, %v1330_v10, -inf }
 0x2d1   :  { %v1332_v13 = vpop.f32.mrf.mxu1  ;;  %v1339_v14 = vsel %vm858_vm0, %v1338_v12, -inf }
 0x2d2   :  { %1340 = vmax.xlane.f32.xlu0 %v1339_v14 }
 0x2d3   :  { %v1644_v15 = vpop.f32.mrf.mxu1 }
 0x35b   :  { %v1341_v16 = vpop.xlane.xlu0 %1340 }
 0x35c   :  { %v1342_v17 = vsub.f32 %v1338_v12, %v1341_v16 }
 0x35e   :  { %v1343_v18 = vmul.f32 1.442695, %v1342_v17 }
 0x360   :  { %1764 = vpow2.f32 %v1343_v18 }
 0x36d   :  { %v1765_v19 = vpop.eup %1764 }
 0x36e   :  { %v1345_v24 = vsel %vm858_vm0, %v1765_v19, 0.0 }
 0x36f   :  { %1346 = vadd.xlane.f32.xlu0 %v1345_v24 }
 0x3f8   :  { %v1347_v20 = vpop.xlane.xlu0 %1346 }
 0x3f9   :  { %1766 = vrcp.f32 %v1347_v20 }
 0x406   :  { %v1767_v21 = vpop.eup %1766 }
 0x407   :  { %v1349_v22 = vmul.f32 %v1767_v21, %v1765_v19 }
 0x409   :  { %1350 = vst [vmem:[#allocation5] sm:$0x3] %v1349_v22 }
 0x40a   :  { %1799 = shalt.err (!%p1796_p9)
}
 0x40b   :  { %1360 = dma.vmem_to_hbm [thread:$0]  %s1358_s5, 32, %s1983_s7, [#allocation4]  }
 0x40c   :  { %1810 = dma.done.wait [#allocation4], 32  }
 0x40d   :  { %1811 = vsyncadd [#allocation4], 4294967264 }
 0x40e   :  { %1364 = vsyncpa [#allocation3], 1 }
 0x40f   :  { %1365 = vsyncpa [#allocation4], 1 }

</bundles_post_ra>
